<compile_context>
chip_gen: v5e
topology: v5e:2x2
jax: 0.10.0
libtpu: 0.0.40
codegen_flags: <defaults>
</compile_context>

<pallas_src>
import functools

import jax
import jax.numpy as jnp
from jax.experimental import pallas as pl
from jax.experimental.pallas import tpu as pltpu


def _round_up(x, m):
    return (x + m - 1) // m * m


def readout_kernel(batch_row_ref, batch_col_ref, x_ref, w_ref, o_ref,
                   sum_acc, cnt_acc, tg_acc, *, n_nodes):
    """grid = (2, NT): axis 0 = pass, axis 1 = node tile.

    batch_row_ref: [1, TILE_N] int32   node -> graph id (row orientation)
    batch_col_ref: [TILE_N, 1] int32   node -> graph id (column orientation)
    x_ref:         [TILE_N, H] bf16    node features (ragged tail handled in-kernel)
    w_ref:         [H, H]      bf16    readout weight (VMEM resident)
    o_ref:         [Bp, H]     f32     output, VMEM-resident accumulator
    sum_acc:       [Bp, H]     f32     per-graph feature sums (scratch)
    cnt_acc:       [Bp, 1]     f32     per-graph node counts (scratch)
    tg_acc:        [Bp, H]     f32     transformed_global (scratch)
    """
    p = pl.program_id(0)
    nt = pl.program_id(1)
    b_pad = o_ref.shape[0]
    tile_n = x_ref.shape[0]
    node_start = nt * tile_n  # global index of first node in this tile

    @pl.when((p == 0) & (nt == 0))
    def _init():
        sum_acc[...] = jnp.zeros_like(sum_acc)
        cnt_acc[...] = jnp.zeros_like(cnt_acc)
        o_ref[...] = jnp.zeros_like(o_ref)

    @pl.when(p == 0)
    def _accumulate_pool():
        # Row-validity (global node index < N) and graph membership, built on the fly.
        valid_r = (node_start + jax.lax.broadcasted_iota(
            jnp.int32, (b_pad, tile_n), 1)) < n_nodes                       # [Bp, TILE_N]
        valid_c = (node_start + jax.lax.broadcasted_iota(
            jnp.int32, (tile_n, 1), 0)) < n_nodes                           # [TILE_N, 1]
        gid_r = jax.lax.broadcasted_iota(jnp.int32, (b_pad, tile_n), 0)
        mask = (gid_r == batch_row_ref[...]) & valid_r                      # [Bp, TILE_N]
        m_bf = mask.astype(jnp.bfloat16)                                    # exact 0/1

        # Zero tail rows explicitly: garbage/NaN * 0 would otherwise poison the matmul.
        x_bf = jnp.where(valid_c, x_ref[...], 0)                            # [TILE_N, H] bf16

        sum_acc[...] += jnp.dot(m_bf, x_bf, preferred_element_type=jnp.float32)
        cnt_acc[...] += jnp.sum(mask.astype(jnp.float32), axis=1, keepdims=True)

    @pl.when((p == 1) & (nt == 0))
    def _transform_global():
        # Exact division (runs once, outside the hot loop).
        mean_pool = sum_acc[...] / jnp.maximum(cnt_acc[...], 1.0)           # [Bp, H]
        tg_acc[...] = jnp.tanh(
            jnp.dot(mean_pool.astype(jnp.bfloat16), w_ref[...],
                    preferred_element_type=jnp.float32))

    @pl.when(p == 1)
    def _weighted_sum():
        valid_r = (node_start + jax.lax.broadcasted_iota(
            jnp.int32, (b_pad, tile_n), 1)) < n_nodes                       # [Bp, TILE_N]
        valid_c = (node_start + jax.lax.broadcasted_iota(
            jnp.int32, (tile_n, 1), 0)) < n_nodes                           # [TILE_N, 1]

        gid_r = jax.lax.broadcasted_iota(jnp.int32, (b_pad, tile_n), 0)
        mask_bn = (gid_r == batch_row_ref[...]) & valid_r                   # [Bp, TILE_N]
        m_bf = mask_bn.astype(jnp.bfloat16)

        gid_c = jax.lax.broadcasted_iota(jnp.int32, (tile_n, b_pad), 1)
        mask_nb = (gid_c == batch_col_ref[...]) & valid_c                   # [TILE_N, Bp]

        x_bf = jnp.where(valid_c, x_ref[...], 0)                            # [TILE_N, H] bf16
        tg_bf = tg_acc[...].astype(jnp.bfloat16)                            # [Bp, H]

        # scores[n, b] = <x[n, :], tg[b, :]> : MXU matmul contracting over H
        # (no transpose, no K=B contraction).
        scores = jax.lax.dot_general(x_bf, tg_bf, (((1,), (1,)), ((), ())),
                                     preferred_element_type=jnp.float32)    # [TILE_N, Bp]
        dots = jnp.sum(jnp.where(mask_nb, scores, 0.0),
                       axis=1, keepdims=True)                               # [TILE_N, 1]
        coefs = jax.nn.sigmoid(dots)                                        # f32

        weighted = coefs.astype(jnp.bfloat16) * x_bf                        # [TILE_N, H] bf16
        o_ref[...] += jnp.dot(m_bf, weighted, preferred_element_type=jnp.float32)


def readout_pallas(x, batch, weight, num_graphs, *, tile_n=1024):
    """x: [N, H] float, batch: [N] int, weight: [H, H] float."""
    N, H = x.shape
    B = int(num_graphs)
    Bp = _round_up(max(B, 8), 8)         # sublane-aligned graph dim

    # Node tile: multiple of 128 (lane-dense batch-row blocks), no larger than needed.
    tile_n = max(128, _round_up(min(int(tile_n), _round_up(N, 128)), 128))

    # Keep double-buffered streams + resident W + accumulators within ~24 MiB
    # (safe under v7x's 64 MiB physical VMEM; vmem_limit set to 48 MiB below).
    def _vmem_est(t):
        return (2 * t * H * 2            # x tile, bf16, double-buffered
                + 2 * 2 * t * 4          # batch row + col tiles, double-buffered
                + H * H * 2              # W resident (bf16)
                + (3 * Bp * H + Bp) * 4  # scratch accumulators
                + 2 * Bp * H * 4)        # output block
    while tile_n > 128 and _vmem_est(tile_n) > 24 * 1024 * 1024:
        tile_n = max(128, (tile_n // 2 // 128) * 128)

    n_tiles = pl.cdiv(N, tile_n)

    # No padded HBM copies: only dtype casts / trivial reshapes.
    x_bf = x.astype(jnp.bfloat16)                 # streamed twice -> bf16 halves HBM bytes
    w_bf = weight.astype(jnp.bfloat16)
    batch_i32 = batch.astype(jnp.int32)
    batch_row = batch_i32.reshape(1, N)
    batch_col = batch_i32.reshape(N, 1)

    flops = (2 * Bp * N * H) * 2 + 2 * N * Bp * H + 2 * Bp * H * H + 6 * N * H
    bytes_accessed = 2 * (N * H * 2) + 2 * (2 * N * 4) + H * H * 2 + Bp * H * 4
    cost = pl.CostEstimate(flops=flops,
                           transcendentals=Bp * H + N + Bp,
                           bytes_accessed=bytes_accessed)

    kernel = functools.partial(readout_kernel, n_nodes=N)

    out = pl.pallas_call(
        kernel,
        out_shape=jax.ShapeDtypeStruct((Bp, H), jnp.float32),
        grid=(2, n_tiles),
        in_specs=[
            pl.BlockSpec((1, tile_n), lambda p, t: (0, t)),    # batch ids (row)
            pl.BlockSpec((tile_n, 1), lambda p, t: (t, 0)),    # batch ids (column)
            pl.BlockSpec((tile_n, H), lambda p, t: (t, 0)),    # x tile (bf16, re-streamed pass 1)
            pl.BlockSpec((H, H), lambda p, t: (0, 0)),         # weight (VMEM resident)
        ],
        out_specs=pl.BlockSpec((Bp, H), lambda p, t: (0, 0)),  # resident accumulator
        scratch_shapes=[
            pltpu.VMEM((Bp, H), jnp.float32),   # sum_acc
            pltpu.VMEM((Bp, 1), jnp.float32),   # cnt_acc
            pltpu.VMEM((Bp, H), jnp.float32),   # tg_acc
        ],
        compiler_params=pltpu.CompilerParams(
            # Two-pass reduction over node tiles: both axes are sequential.
            dimension_semantics=("arbitrary", "arbitrary"),
            vmem_limit_bytes=48 * 1024 * 1024,
        ),
        cost_estimate=cost,
    )(batch_row, batch_col, x_bf, w_bf)

    return out[:B, :]


def readout_ref(x, batch, weight, num_graphs):
    """Pure-JAX (f32) reference mirroring the PyTorch forward."""
    sums = jax.ops.segment_sum(x, batch, num_segments=num_graphs)
    counts = jax.ops.segment_sum(jnp.ones((x.shape[0],), x.dtype), batch,
                                 num_segments=num_graphs)
    mean_pool = sums / jnp.maximum(counts, 1.0)[:, None]
    tg = jnp.tanh(mean_pool @ weight)
    coefs = jax.nn.sigmoid(jnp.sum(x * tg[batch], axis=1))
    weighted = coefs[:, None] * x
    return jax.ops.segment_sum(weighted, batch, num_segments=num_graphs)


if __name__ == "__main__":
    key = jax.random.PRNGKey(0)
    k_x, k_w = jax.random.split(key)

    nhid = 32          # args.nhid
    num_nodes = 8      # total nodes across the batch
    num_graphs = 2     # graphs in the batch

    x = jax.random.normal(k_x, (num_nodes, nhid), dtype=jnp.float32)
    batch = jnp.array([0, 0, 0, 1, 1, 1, 1, 1], dtype=jnp.int32)

    # xavier_uniform_ init for weight [nhid, nhid]
    limit = (6.0 / (nhid + nhid)) ** 0.5
    weight = jax.random.uniform(k_w, (nhid, nhid), dtype=jnp.float32,
                                minval=-limit, maxval=limit)

    out = readout_pallas(x, batch, weight, num_graphs)
    out = jax.block_until_ready(out)

    ref = readout_ref(x, batch, weight, num_graphs)
    assert out.shape == (num_graphs, nhid)
    # bf16 MXU inputs / bf16-streamed x -> loosened tolerance vs f32 reference.
    assert jnp.allclose(out, ref, atol=5e-2, rtol=5e-2), (
        f"mismatch vs reference, max abs diff = {jnp.max(jnp.abs(out - ref))}")
    print("KERNEL_OK")
</pallas_src>

<mosaic_0001>
module attributes {stable_mosaic.version = 11 : i64} {
  func.func @readout_kernel(%arg0: i32, %arg1: i32, %arg2: memref<1x128xi32, #tpu.memory_space<vmem>>, %arg3: memref<128x1xi32, #tpu.memory_space<vmem>>, %arg4: memref<128x32xbf16, #tpu.memory_space<vmem>>, %arg5: memref<32x32xbf16, #tpu.memory_space<vmem>>, %arg6: memref<8x32xf32, #tpu.memory_space<vmem>>, %arg7: memref<8x32xf32, #tpu.memory_space<vmem>>, %arg8: memref<8x1xf32, #tpu.memory_space<vmem>>, %arg9: memref<8x32xf32, #tpu.memory_space<vmem>>) attributes {dimension_semantics = [#tpu.dimension_semantics<arbitrary>, #tpu.dimension_semantics<arbitrary>], iteration_bounds = array<i64: 2, 1>, scalar_prefetch = 0 : i64, scratch_operands = 3 : i64, tpu.core_type = #tpu.core_type<tc>, window_params = [{transform_indices = @transform_0, window_bounds = array<i64: 1, 128>}, {transform_indices = @transform_1, window_bounds = array<i64: 128, 1>}, {transform_indices = @transform_2, window_bounds = array<i64: 128, 32>}, {pipeline_mode = #tpu.pipeline_mode<synchronous>, transform_indices = @transform_3, window_bounds = array<i64: 32, 32>}, {pipeline_mode = #tpu.pipeline_mode<synchronous>, transform_indices = @transform_4, window_bounds = array<i64: 8, 32>}]} {
    %c128_i32 = arith.constant 128 : i32
    %0 = arith.muli %arg1, %c128_i32 : i32
    %c0_i32 = arith.constant 0 : i32
    %1 = arith.cmpi eq, %arg0, %c0_i32 : i32
    %c0_i32_0 = arith.constant 0 : i32
    %2 = arith.cmpi eq, %arg1, %c0_i32_0 : i32
    %3 = arith.andi %1, %2 : i1
    %4 = arith.extui %3 : i1 to i32
    %c0_i32_1 = arith.constant 0 : i32
    %5 = arith.cmpi ne, %4, %c0_i32_1 : i32
    scf.if %5 {
      %cst = arith.constant 0.000000e+00 : f32
      %17 = vector.broadcast %cst : f32 to vector<8x32xf32>
      %c0 = arith.constant 0 : index
      %c0_8 = arith.constant 0 : index
      %18 = vector.load %arg7[%c0, %c0_8] : memref<8x32xf32, #tpu.memory_space<vmem>>, vector<8x32xf32>
      tpu.vector_store %arg7[%c0, %c0_8], %17 {strides = array<i32>} : memref<8x32xf32, #tpu.memory_space<vmem>>, vector<8x32xf32>,
      %cst_9 = arith.constant 0.000000e+00 : f32
      %19 = vector.broadcast %cst_9 : f32 to vector<8x1xf32>
      %c0_10 = arith.constant 0 : index
      %c0_11 = arith.constant 0 : index
      %20 = vector.load %arg8[%c0_10, %c0_11] : memref<8x1xf32, #tpu.memory_space<vmem>>, vector<8x1xf32>
      tpu.vector_store %arg8[%c0_10, %c0_11], %19 {strides = array<i32>} : memref<8x1xf32, #tpu.memory_space<vmem>>, vector<8x1xf32>,
      %cst_12 = arith.constant 0.000000e+00 : f32
      %21 = vector.broadcast %cst_12 : f32 to vector<8x32xf32>
      %c0_13 = arith.constant 0 : index
      %c0_14 = arith.constant 0 : index
      %22 = vector.load %arg6[%c0_13, %c0_14] : memref<8x32xf32, #tpu.memory_space<vmem>>, vector<8x32xf32>
      tpu.vector_store %arg6[%c0_13, %c0_14], %21 {strides = array<i32>} : memref<8x32xf32, #tpu.memory_space<vmem>>, vector<8x32xf32>,
    } else {
    }
    %c0_i32_2 = arith.constant 0 : i32
    %6 = arith.cmpi eq, %arg0, %c0_i32_2 : i32
    %7 = arith.extui %6 : i1 to i32
    %c0_i32_3 = arith.constant 0 : i32
    %8 = arith.cmpi ne, %7, %c0_i32_3 : i32
    scf.if %8 {
      %17 = tpu.iota {dimensions = array<i32: 1>} : vector<8x128xi32>
      %18 = vector.broadcast %0 : i32 to vector<8x128xi32>
      %19 = arith.addi %18, %17 : vector<8x128xi32>
      %c8_i32 = arith.constant 8 : i32
      %20 = vector.broadcast %c8_i32 : i32 to vector<8x128xi32>
      %21 = arith.cmpi slt, %19, %20 : vector<8x128xi32>
      %22 = tpu.iota {dimensions = array<i32: 0>} : vector<128x1xi32>
      %23 = vector.broadcast %0 : i32 to vector<128x1xi32>
      %24 = arith.addi %23, %22 : vector<128x1xi32>
      %c8_i32_8 = arith.constant 8 : i32
      %25 = vector.broadcast %c8_i32_8 : i32 to vector<128x1xi32>
      %26 = arith.cmpi slt, %24, %25 : vector<128x1xi32>
      %27 = tpu.iota {dimensions = array<i32: 0>} : vector<8x128xi32>
      %c0 = arith.constant 0 : index
      %c0_9 = arith.constant 0 : index
      %28 = vector.load %arg2[%c0, %c0_9] : memref<1x128xi32, #tpu.memory_space<vmem>>, vector<1x128xi32>
      %29 = vector.broadcast %28 : vector<1x128xi32> to vector<8x128xi32>
      %30 = arith.cmpi eq, %27, %29 : vector<8x128xi32>
      %31 = arith.andi %30, %21 : vector<8x128xi1>
      %32 = arith.extui %31 : vector<8x128xi1> to vector<8x128xi32>
      %33 = arith.sitofp %32 : vector<8x128xi32> to vector<8x128xf32>
      %34 = arith.truncf %33 : vector<8x128xf32> to vector<8x128xbf16>
      %c0_10 = arith.constant 0 : index
      %c0_11 = arith.constant 0 : index
      %35 = vector.load %arg4[%c0_10, %c0_11] : memref<128x32xbf16, #tpu.memory_space<vmem>>, vector<128x32xbf16>
      %c0_i32_12 = arith.constant 0 : i32
      %36 = arith.sitofp %c0_i32_12 : i32 to bf16
      %37 = vector.shape_cast %26 : vector<128x1xi1> to vector<128x1xi1>
      %38 = vector.broadcast %37 : vector<128x1xi1> to vector<128x32xi1>
      %39 = vector.broadcast %36 : bf16 to vector<128x32xbf16>
      %40 = arith.select %38, %35, %39 : vector<128x32xi1>, vector<128x32xbf16>
      %c0_13 = arith.constant 0 : index
      %c0_14 = arith.constant 0 : index
      %41 = vector.load %arg7[%c0_13, %c0_14] : memref<8x32xf32, #tpu.memory_space<vmem>>, vector<8x32xf32>
      %cst = arith.constant dense<0.000000e+00> : vector<8x32xf32>
      %42 = tpu.matmul %34, %40, %cst {dimension_numbers = #tpu.dot_dimension_numbers<[1], [0], [0], [1], [0, 0, 1, 1], [], []>} : vector<8x128xbf16>, vector<128x32xbf16>, vector<8x32xf32> -> vector<8x32xf32>
      %43 = arith.addf %41, %42 : vector<8x32xf32>
      %c0_15 = arith.constant 0 : index
      %c0_16 = arith.constant 0 : index
      %44 = vector.load %arg7[%c0_15, %c0_16] : memref<8x32xf32, #tpu.memory_space<vmem>>, vector<8x32xf32>
      tpu.vector_store %arg7[%c0_15, %c0_16], %43 {strides = array<i32>} : memref<8x32xf32, #tpu.memory_space<vmem>>, vector<8x32xf32>,
      %c0_17 = arith.constant 0 : index
      %c0_18 = arith.constant 0 : index
      %45 = vector.load %arg8[%c0_17, %c0_18] : memref<8x1xf32, #tpu.memory_space<vmem>>, vector<8x1xf32>
      %46 = arith.extui %31 : vector<8x128xi1> to vector<8x128xi32>
      %47 = arith.sitofp %46 : vector<8x128xi32> to vector<8x128xf32>
      %cst_19 = arith.constant dense<0.000000e+00> : vector<8xf32>
      %48 = vector.multi_reduction <add>, %47, %cst_19 [1] : vector<8x128xf32> to vector<8xf32>
      %49 = vector.shape_cast %48 : vector<8xf32> to vector<8x1xf32>
      %50 = arith.addf %45, %49 : vector<8x1xf32>
      %c0_20 = arith.constant 0 : index
      %c0_21 = arith.constant 0 : index
      %51 = vector.load %arg8[%c0_20, %c0_21] : memref<8x1xf32, #tpu.memory_space<vmem>>, vector<8x1xf32>
      tpu.vector_store %arg8[%c0_20, %c0_21], %50 {strides = array<i32>} : memref<8x1xf32, #tpu.memory_space<vmem>>, vector<8x1xf32>,
    } else {
    }
    %c1_i32 = arith.constant 1 : i32
    %9 = arith.cmpi eq, %arg0, %c1_i32 : i32
    %c0_i32_4 = arith.constant 0 : i32
    %10 = arith.cmpi eq, %arg1, %c0_i32_4 : i32
    %11 = arith.andi %9, %10 : i1
    %12 = arith.extui %11 : i1 to i32
    %c0_i32_5 = arith.constant 0 : i32
    %13 = arith.cmpi ne, %12, %c0_i32_5 : i32
    scf.if %13 {
      %c0 = arith.constant 0 : index
      %c0_8 = arith.constant 0 : index
      %17 = vector.load %arg7[%c0, %c0_8] : memref<8x32xf32, #tpu.memory_space<vmem>>, vector<8x32xf32>
      %c0_9 = arith.constant 0 : index
      %c0_10 = arith.constant 0 : index
      %18 = vector.load %arg8[%c0_9, %c0_10] : memref<8x1xf32, #tpu.memory_space<vmem>>, vector<8x1xf32>
      %cst = arith.constant 1.000000e+00 : f32
      %19 = vector.broadcast %cst : f32 to vector<8x1xf32>
      %20 = arith.maximumf %18, %19 : vector<8x1xf32>
      %21 = vector.broadcast %20 : vector<8x1xf32> to vector<8x32xf32>
      %22 = arith.divf %17, %21 : vector<8x32xf32>
      %23 = arith.truncf %22 : vector<8x32xf32> to vector<8x32xbf16>
      %c0_11 = arith.constant 0 : index
      %c0_12 = arith.constant 0 : index
      %24 = vector.load %arg5[%c0_11, %c0_12] : memref<32x32xbf16, #tpu.memory_space<vmem>>, vector<32x32xbf16>
      %cst_13 = arith.constant dense<0.000000e+00> : vector<8x32xf32>
      %25 = tpu.matmul %23, %24, %cst_13 {dimension_numbers = #tpu.dot_dimension_numbers<[1], [0], [0], [1], [0, 0, 1, 1], [], []>} : vector<8x32xbf16>, vector<32x32xbf16>, vector<8x32xf32> -> vector<8x32xf32>
      %26 = math.tanh %25 : vector<8x32xf32>
      %c0_14 = arith.constant 0 : index
      %c0_15 = arith.constant 0 : index
      %27 = vector.load %arg9[%c0_14, %c0_15] : memref<8x32xf32, #tpu.memory_space<vmem>>, vector<8x32xf32>
      tpu.vector_store %arg9[%c0_14, %c0_15], %26 {strides = array<i32>} : memref<8x32xf32, #tpu.memory_space<vmem>>, vector<8x32xf32>,
    } else {
    }
    %c1_i32_6 = arith.constant 1 : i32
    %14 = arith.cmpi eq, %arg0, %c1_i32_6 : i32
    %15 = arith.extui %14 : i1 to i32
    %c0_i32_7 = arith.constant 0 : i32
    %16 = arith.cmpi ne, %15, %c0_i32_7 : i32
    scf.if %16 {
      %17 = tpu.iota {dimensions = array<i32: 1>} : vector<8x128xi32>
      %18 = vector.broadcast %0 : i32 to vector<8x128xi32>
      %19 = arith.addi %18, %17 : vector<8x128xi32>
      %c8_i32 = arith.constant 8 : i32
      %20 = vector.broadcast %c8_i32 : i32 to vector<8x128xi32>
      %21 = arith.cmpi slt, %19, %20 : vector<8x128xi32>
      %22 = tpu.iota {dimensions = array<i32: 0>} : vector<128x1xi32>
      %23 = vector.broadcast %0 : i32 to vector<128x1xi32>
      %24 = arith.addi %23, %22 : vector<128x1xi32>
      %c8_i32_8 = arith.constant 8 : i32
      %25 = vector.broadcast %c8_i32_8 : i32 to vector<128x1xi32>
      %26 = arith.cmpi slt, %24, %25 : vector<128x1xi32>
      %27 = tpu.iota {dimensions = array<i32: 0>} : vector<8x128xi32>
      %c0 = arith.constant 0 : index
      %c0_9 = arith.constant 0 : index
      %28 = vector.load %arg2[%c0, %c0_9] : memref<1x128xi32, #tpu.memory_space<vmem>>, vector<1x128xi32>
      %29 = vector.broadcast %28 : vector<1x128xi32> to vector<8x128xi32>
      %30 = arith.cmpi eq, %27, %29 : vector<8x128xi32>
      %31 = arith.andi %30, %21 : vector<8x128xi1>
      %32 = arith.extui %31 : vector<8x128xi1> to vector<8x128xi32>
      %33 = arith.sitofp %32 : vector<8x128xi32> to vector<8x128xf32>
      %34 = arith.truncf %33 : vector<8x128xf32> to vector<8x128xbf16>
      %35 = tpu.iota {dimensions = array<i32: 1>} : vector<128x8xi32>
      %c0_10 = arith.constant 0 : index
      %c0_11 = arith.constant 0 : index
      %36 = vector.load %arg3[%c0_10, %c0_11] : memref<128x1xi32, #tpu.memory_space<vmem>>, vector<128x1xi32>
      %37 = vector.broadcast %36 : vector<128x1xi32> to vector<128x8xi32>
      %38 = arith.cmpi eq, %35, %37 : vector<128x8xi32>
      %39 = vector.broadcast %26 : vector<128x1xi1> to vector<128x8xi1>
      %40 = arith.andi %38, %39 : vector<128x8xi1>
      %c0_12 = arith.constant 0 : index
      %c0_13 = arith.constant 0 : index
      %41 = vector.load %arg4[%c0_12, %c0_13] : memref<128x32xbf16, #tpu.memory_space<vmem>>, vector<128x32xbf16>
      %c0_i32_14 = arith.constant 0 : i32
      %42 = arith.sitofp %c0_i32_14 : i32 to bf16
      %43 = vector.shape_cast %26 : vector<128x1xi1> to vector<128x1xi1>
      %44 = vector.broadcast %43 : vector<128x1xi1> to vector<128x32xi1>
      %45 = vector.broadcast %42 : bf16 to vector<128x32xbf16>
      %46 = arith.select %44, %41, %45 : vector<128x32xi1>, vector<128x32xbf16>
      %c0_15 = arith.constant 0 : index
      %c0_16 = arith.constant 0 : index
      %47 = vector.load %arg9[%c0_15, %c0_16] : memref<8x32xf32, #tpu.memory_space<vmem>>, vector<8x32xf32>
      %48 = arith.truncf %47 : vector<8x32xf32> to vector<8x32xbf16>
      %cst = arith.constant dense<0.000000e+00> : vector<128x8xf32>
      %49 = tpu.matmul %46, %48, %cst {dimension_numbers = #tpu.dot_dimension_numbers<[1], [1], [0], [0], [0, 0, 1, 0], [], []>} : vector<128x32xbf16>, vector<8x32xbf16>, vector<128x8xf32> -> vector<128x8xf32>
      %cst_17 = arith.constant 0.000000e+00 : f32
      %50 = vector.broadcast %cst_17 : f32 to vector<128x8xf32>
      %51 = arith.select %40, %49, %50 : vector<128x8xi1>, vector<128x8xf32>
      %cst_18 = arith.constant dense<0.000000e+00> : vector<128xf32>
      %52 = vector.multi_reduction <add>, %51, %cst_18 [1] : vector<128x8xf32> to vector<128xf32>
      %53 = vector.shape_cast %52 : vector<128xf32> to vector<128x1xf32>
      %54 = arith.negf %53 : vector<128x1xf32>
      %55 = math.exp %54 : vector<128x1xf32>
      %cst_19 = arith.constant 1.000000e+00 : f32
      %56 = vector.broadcast %cst_19 : f32 to vector<128x1xf32>
      %57 = arith.addf %56, %55 : vector<128x1xf32>
      %58 = arith.divf %56, %57 : vector<128x1xf32>
      %59 = arith.truncf %58 : vector<128x1xf32> to vector<128x1xbf16>
      %60 = vector.broadcast %59 : vector<128x1xbf16> to vector<128x32xbf16>
      %61 = arith.mulf %60, %46 : vector<128x32xbf16>
      %c0_20 = arith.constant 0 : index
      %c0_21 = arith.constant 0 : index
      %62 = vector.load %arg6[%c0_20, %c0_21] : memref<8x32xf32, #tpu.memory_space<vmem>>, vector<8x32xf32>
      %cst_22 = arith.constant dense<0.000000e+00> : vector<8x32xf32>
      %63 = tpu.matmul %34, %61, %cst_22 {dimension_numbers = #tpu.dot_dimension_numbers<[1], [0], [0], [1], [0, 0, 1, 1], [], []>} : vector<8x128xbf16>, vector<128x32xbf16>, vector<8x32xf32> -> vector<8x32xf32>
      %64 = arith.addf %62, %63 : vector<8x32xf32>
      %c0_23 = arith.constant 0 : index
      %c0_24 = arith.constant 0 : index
      %65 = vector.load %arg6[%c0_23, %c0_24] : memref<8x32xf32, #tpu.memory_space<vmem>>, vector<8x32xf32>
      tpu.vector_store %arg6[%c0_23, %c0_24], %64 {strides = array<i32>} : memref<8x32xf32, #tpu.memory_space<vmem>>, vector<8x32xf32>,
    } else {
    }
    return
  }
  func.func @transform_0(%arg0: i32, %arg1: i32) -> (i32, i32) {
    %c0_i32 = arith.constant 0 : i32
    %c0_i32_0 = arith.constant 0 : i32
    return %c0_i32, %arg1 : i32, i32
  }
  func.func @transform_1(%arg0: i32, %arg1: i32) -> (i32, i32) {
    %c0_i32 = arith.constant 0 : i32
    %c0_i32_0 = arith.constant 0 : i32
    return %arg1, %c0_i32 : i32, i32
  }
  func.func @transform_2(%arg0: i32, %arg1: i32) -> (i32, i32) {
    %c0_i32 = arith.constant 0 : i32
    %c0_i32_0 = arith.constant 0 : i32
    return %arg1, %c0_i32 : i32, i32
  }
  func.func @transform_3(%arg0: i32, %arg1: i32) -> (i32, i32) {
    %c0_i32 = arith.constant 0 : i32
    %c0_i32_0 = arith.constant 0 : i32
    %c0_i32_1 = arith.constant 0 : i32
    return %c0_i32, %c0_i32_0 : i32, i32
  }
  func.func @transform_4(%arg0: i32, %arg1: i32) -> (i32, i32) {
    %c0_i32 = arith.constant 0 : i32
    %c0_i32_0 = arith.constant 0 : i32
    %c0_i32_1 = arith.constant 0 : i32
    return %c0_i32, %c0_i32_0 : i32, i32
  }
}

</mosaic_0001>

<bundles_post_ra>
// kernel: tpu_custom_call.1
= control target key start
LH: loop header
LB: loop body
LE: loop exit
PB: predicated region body
PF: predicated region fallthrough
CT: control target
= control target key end

     0   :  { %9 = vsyncpa [#allocation6], 0  ;;  %s2442_s0 = inlined_call_operand.vmem [shape: s32[1,8], index: 0, kind: input, shape index: {}]   ;;  %s2443_s1 = inlined_call_operand.vmem [shape: s32[8,1], index: 1, kind: input, shape index: {}]   ;;  %s2444_s2 = inlined_call_operand.vmem [shape: bf16[8,32], index: 2, kind: input, shape index: {}]   ;;  %s2445_s3 = inlined_call_operand.hbm [shape: bf16[32,32], index: 3, kind: input, shape index: {}]   ;;  %s2446_s4 = inlined_call_operand.hbm [shape: f32[8,32], index: 4, kind: output, shape index: {}]  }
   0x1   :  { %10 = vsyncpa [#allocation7], 0  ;;  %s1796_s15 = smov 0   ;;  %s1798_s16 = smov 0  }
   0x2   :  { %s1800_s17 = smov 0  }
   0x3 LB: > { %s1478_s18 = sadd.s32 4294967295, %s1754_s17   ;;  %s28_s19 = sadd.s32 1, %s1750_s16  ;;  %s1754_s17 = sphi %s1800_s17, %s16_s17   ;;  %s1750_s16 = sphi %s1798_s16, %s2488_s16   ;;  %s1746_s15 = sphi %s1796_s15, %s2487_s15  }
   0x4   : > { %p30_p0 = scmp.ge.s32.totalorder %s28_s19, 2  ;;  %p1479_p1 = scmp.ge.s32.totalorder %s1754_s17, 1 }
   0x5   : > { %p153_p2 = scmp.lt.s32.totalorder %s1754_s17, 3  ;;  %p1551_p4 = scmp.eq.s32.totalorder %s1478_s18, 0 }
   0x6   : > { %s2490_s19 = smov (%p30_p0, %s28_s19), 0  ;;  %s196_s22 = sshll.u32 %s2445_s3, 4  ;;  %s197_s22 = int_to_ptr.hbm [resolvable:$true] %s196_s22 }
   0x7   : > { %p154_p3 = pnand %p1479_p1, %p153_p2  ;;  %s1756_s23 = smov [#allocation5]  }
   0x8   : > { %s198_s24 = sshll.u32 %s1756_s23, 4  ;;  %s1757_s25 = smov 64   ;;  %s199_s24 = int_to_ptr.vmem [resolvable:$true] %s198_s24 }
   0x9   : > { %p1547_p5 = pneg %p154_p3  ;;  %s1758_s26 = smov 4  }
   0xa   : > { %214 = sbr.rel (%p154_p3) target bundleno = 917 (0x395), region = 36 }
   0xb   : > { %p1548_p6 = pnand %p1551_p4, %p1547_p5 }
   0xd   : > { %1550 = dma.hbm_to_vmem [thread:$0]  (!%p1548_p6), %s197_s22, 256, %s199_s24, [#allocation6], %s1757_s25, %s1757_s25, %s1758_s26  }
   0xf   : > { %1737 = dma.done.wait (%p1551_p4), [#allocation6], 256  }
  0x10   : > { %1739 = vsyncadd (%p1551_p4), [#allocation6], 4294967040  ;;  %p273_p7 = scmp.eq.s32.totalorder %s1746_s15, 0 }
  0x11   : > { %vm279_vm0 = vcmask (%p273_p7), 261120   ;;  %vm281_vm1 = vcmask (%p273_p7), 7168   ;;  %v1759_v0 = vmov (%p273_p7), 0.0  }
  0x12   : > { %278 = sbr.rel (!%p273_p7) target bundleno = 23 (0x17), region = 44  ;;  %280 = vst.msk [vmem:[#allocation2] sm:$0xff] (%p273_p7), %vm279_vm0, %v1759_v0 }
  0x13   : > { %283 = vst.msk [vmem:[#allocation8] sm:$0xff] (%p273_p7), %vm279_vm0, %v1759_v0 }
  0x14   : > { %282 = vst.msk [vmem:[#allocation3] sm:$0xff] (%p273_p7), %vm281_vm1, %v1759_v0 }
  0x17 PF: > { %p1487_p8 = scmp.ne.s32.totalorder %s1746_s15, 0 }
  0x19   : > { %286 = sbr.rel (%p1487_p8) target bundleno = 202 (0xca), region = 48 }
  0x1e   : > { %v362_v1 = vld [vmem:[%s2444_s2 + $0x38] sm:$0xf]  ;;  %v363_v2 = vld [vmem:[%s2444_s2 + $0x3c] sm:$0xf]  ;;  %vm1760_vm2 = vmmov 0   ;;  %v287_v21 = vlaneseq  ;;  %v1761_v43 = vmov 0.0  }
  0x1f   : > { %vm1830_vm3 = vmpackc.low %vm1760_vm2, %vm1760_vm2  ;;  %v360_v4 = vld [vmem:[%s2444_s2 + $0x30] sm:$0xf]  ;;  %v361_v5 = vld [vmem:[%s2444_s2 + $0x34] sm:$0xf]  ;;  %vm1762_vm7 = vmmov 1   ;;  %vm497_vm10 = vcmask 7168  }
  0x20   : > { %v426_v6 = vsel %vm1830_vm3, %v362_v1, 0  ;;  %v427_v7 = vsel %vm1830_vm3, %v363_v2, 0  ;;  %v424_v8 = vsel %vm1830_vm3, %v360_v4, 0  ;;  %v425_v9 = vsel %vm1830_vm3, %v361_v5, 0  ;;  %v358_v10 = vld [vmem:[%s2444_s2 + $0x28] sm:$0xf]  ;;  %vm396_vm8 = vmpackc.low %vm1762_vm7, %vm1762_vm7 }
  0x21   : > { %v459_v11 = vunpack.c.l.b16 %v426_v6  ;;  %v460_v12 = vunpack.c.l.b16 %v427_v7  ;;  %v457_v13 = vunpack.c.l.b16 %v424_v8  ;;  %v458_v14 = vunpack.c.l.b16 %v425_v9  ;;  %v359_v15 = vld [vmem:[%s2444_s2 + $0x2c] sm:$0xf]  ;;  %v356_v19 = vld [vmem:[%s2444_s2 + $0x20] sm:$0xf]  ;;  %v357_v20 = vld [vmem:[%s2444_s2 + $0x24] sm:$0xf] }
  0x22   : > { %v422_v16 = vsel %vm1830_vm3, %v358_v10, 0  ;;  %v423_v17 = vsel %vm1830_vm3, %v359_v15, 0  ;;  %v420_v25 = vsel %vm1830_vm3, %v356_v19, 0  ;;  %v421_v26 = vsel %vm1830_vm3, %v357_v20, 0  ;;  %v354_v27 = vld [vmem:[%s2444_s2 + $0x18] sm:$0xf] }
  0x23   : > { %v468_v18 = vpack.c.b16 %v460_v12, %v459_v11  ;;  %v467_v22 = vpack.c.b16 %v458_v14, %v457_v13  ;;  %v455_v23 = vunpack.c.l.b16 %v422_v16  ;;  %v456_v24 = vunpack.c.l.b16 %v423_v17  ;;  %v355_v28 = vld [vmem:[%s2444_s2 + $0x1c] sm:$0xf]  ;;  %v1594_v29 = vld [vmem:[%s2442_s0] ss:$0 sm:$0xff]  ;;  %v352_v37 = vld [vmem:[%s2444_s2 + $0x10] sm:$0xf] }
  0x24   : > { %v288_v30 = vand.u32 127, %v287_v21  ;;  %v453_v32 = vunpack.c.l.b16 %v420_v25  ;;  %v454_v33 = vunpack.c.l.b16 %v421_v26  ;;  %v293_v34 = vshrl.u32 %v287_v21, 7  ;;  %v353_v38 = vld [vmem:[%s2444_s2 + $0x14] sm:$0xf]  ;;  %v350_v47 = vld [vmem:[%s2444_s2 + $0x8] sm:$0xf] }
  0x25   : > { %477 = vmatpush.bf16.msra.mxu0 %v468_v18  ;;  %v466_v31 = vpack.c.b16 %v456_v24, %v455_v23  ;;  %v418_v35 = vsel %vm1830_vm3, %v354_v27, 0  ;;  %v419_v36 = vsel %vm1830_vm3, %v355_v28, 0  ;;  %v416_v45 = vsel %vm1830_vm3, %v352_v37, 0  ;;  %v351_v48 = vld [vmem:[%s2444_s2 + $0xc] sm:$0xf]  ;;  %v428_v3 = vld [vmem:[#allocation2] sm:$0xff] }
  0x26   : > { %vm291_vm4 = vcmp.lt.s32.totalorder %v288_v30, 8  ;;  %vm343_vm5 = vcmp.eq.s32.totalorder %v293_v34, %v1594_v29  ;;  %v465_v40 = vpack.c.b16 %v454_v33, %v453_v32  ;;  %v451_v41 = vunpack.c.l.b16 %v418_v35  ;;  %v348_v54 = vld [vmem:[%s2444_s2] sm:$0xf]  ;;  %v349_v55 = vld [vmem:[%s2444_s2 + $0x4] sm:$0xf]  ;;  %v493_v2 = vld [vmem:[#allocation3] sm:$0xff] }
  0x27   : > { %vm1887_vm6 = vmand %vm343_vm5, %vm291_vm4  ;;  %v452_v42 = vunpack.c.l.b16 %v419_v36  ;;  %v417_v46 = vsel %vm1830_vm3, %v353_v38, 0  ;;  %v449_v50 = vunpack.c.l.b16 %v416_v45  ;;  %v414_v52 = vsel %vm1830_vm3, %v350_v47, 0 }
  0x28   : > { %v1488_v44 = vsel %vm1887_vm6, 1.0, %v1761_v43  ;;  %v450_v51 = vunpack.c.l.b16 %v417_v46  ;;  %v415_v53 = vsel %vm1830_vm3, %v351_v48, 0  ;;  %v447_v57 = vunpack.c.l.b16 %v414_v52  ;;  %vm1489_vm9 = vmpackc.low %vm1887_vm6, %vm1887_vm6 }
  0x29   : > { %478 = vmatpush.bf16.msra.mxu0 %v467_v22  ;;  %494 = vadd.xlane.f32.xlu0 %v1488_v44  ;;  %v464_v49 = vpack.c.b16 %v452_v42, %v451_v41  ;;  %v448_v58 = vunpack.c.l.b16 %v415_v53  ;;  %v412_v59 = vsel %vm396_vm8, %v348_v54, 0  ;;  %v413_v60 = vsel %vm1830_vm3, %v349_v55, 0 }
  0x2a   : > { %v463_v56 = vpack.c.b16 %v450_v51, %v449_v50  ;;  %v445_v62 = vunpack.c.l.b16 %v412_v59  ;;  %v446_v63 = vunpack.c.l.b16 %v413_v60  ;;  %v1763_v1 = vmov 1.0|1.0  }
  0x2b   : > { %v462_v61 = vpack.c.b16 %v448_v58, %v447_v57  ;;  %vm491_vm11 = vcmask 261120  }
  0x2c   : > { %v461_v0 = vpack.c.b16 %v446_v63, %v445_v62 }
  0x2d   : > { %479 = vmatpush.bf16.msra.mxu0 %v466_v31 }
  0x31   : > { %480 = vmatpush.bf16.msra.mxu0 %v465_v40 }
  0x35   : > { %481 = vmatpush.bf16.msra.mxu0 %v464_v49 }
  0x39   : > { %482 = vmatpush.bf16.msra.mxu0 %v463_v56 }
  0x3d   : > { %483 = vmatpush.bf16.msra.mxu0 %v462_v61 }
  0x41   : > { %484 = vmatpush.bf16.msra.mxu0 %v461_v0 }
  0x44   : > { %1490 = vmatmul.msk.bf16.vlgmr.msra.gmra.mxu0 %vm1489_vm9, %v1763_v1 }
  0x9c   : > { %v495_v4 = vpop.xlane.xlu0 %494 }
  0x9d   : > { %v496_v5 = vadd.f32 %v495_v4, %v493_v2 }
  0x9f   : > { %498 = vst.msk [vmem:[#allocation3] sm:$0xff] %vm497_vm10, %v496_v5 }
  0xc1   : > { %v486_v6 = vpop.f32.mrf.mxu0 }
  0xc2   : > { %v490_v7 = vadd.f32 %v486_v6, %v428_v3 }
  0xc4   : > { %492 = vst.msk [vmem:[#allocation2] sm:$0xff] %vm491_vm11, %v490_v7 }
  0xc9   : > { %v488_v8 = vpop.f32.mrf.mxu0 }
  0xca PF: > { %p499_p9 = scmp.eq.s32.totalorder %s1746_s15, 1 }
  0xcb   : > { %v505_v9 = vld [vmem:[#allocation3] sm:$0xff] (%p499_p9)  ;;  %v1764_v10 = vmov (%p499_p9), 0   ;;  %v1536_v12 = vld [vmem:[#allocation5 + $0x8] sm:$0xff] (%p499_p9)  ;;  %v1535_v13 = vld [vmem:[#allocation5] sm:$0xff] (%p499_p9)  ;;  %vm544_vm0 = vcmask (%p499_p9), 261120  }
  0xcc   : > { %503 = sbr.rel (!%p499_p9) target bundleno = 476 (0x1dc), region = 52  ;;  %1595 = vset.pattern.permute.xlu0 (%p499_p9), %v1764_v10  ;;  %v506_v11 = vmax.f32 (%p499_p9), %v505_v9, 1.0  ;;  %554 = vmatpush.bf16.msra.mxu0 (%p499_p9), %v1536_v12  ;;  %v504_v23 = vld [vmem:[#allocation2] sm:$0xff] (%p499_p9) }
  0xce   : > { %509 = vperm.xlu0 (%p499_p9), %1595, %v506_v11  }
  0xd0   : > { %555 = vmatpush.bf16.msra.mxu0 (%p499_p9), %v1535_v13 }
 0x140   : > { %v510_v14 = vpop.permute.xlu0 %509 }
 0x141   : > { %1596 = vrcp.f32 %v510_v14  ;;  %v523_v18 = vand.u32 2147483648, %v510_v14  ;;  %v521_v20 = vand.u32 2147483647, %v510_v14  ;;  %vm517_vm13 = vweird.f32 %v510_v14 }
 0x143   : > { %v524_v22 = vor.u32 1.1754944e-38, %v523_v18  ;;  %vm522_vm15 = vcmp.eq.f32.partialorder %v521_v20, 8.507059e+37 }
 0x147   : > { %v1597_v15 = vpop.eup %1596 }
 0x148   : > { %v513_v16 = vmul.f32 %v1597_v15, %v510_v14  ;;  %vm518_vm12 = vweird.f32 %v1597_v15 }
 0x149   : > { %vm519_vm14 = vmor %vm517_vm13, %vm518_vm12 }
 0x14a   : > { %v514_v17 = vsub.f32 1.0, %v513_v16 }
 0x14c   : > { %v515_v19 = vmul.f32 %v1597_v15, %v514_v17 }
 0x14e   : > { %v516_v21 = vadd.f32 %v1597_v15, %v515_v19 }
 0x150   : > { %v520_v24 = vsel %vm519_vm14, %v1597_v15, %v516_v21 }
 0x151   : > { %v525_v25 = vsel %vm522_vm15, %v524_v22, %v520_v24 }
 0x152   : > { %v526_v26 = vmul.f32 %v525_v25, %v504_v23 }
 0x154   : > { %v527_v27 = vpack.c.bf16 %v526_v26, %v526_v26 }
 0x156   : > { %1500 = vmatmul.msk.bf16.vlgmr.msra.gmra.mxu0 %vm544_vm0, %v527_v27 }
 0x1d3   : > { %v557_v28 = vpop.f32.mrf.mxu0 }
 0x1d4   : > { %1598 = vtanh.f32 %v557_v28 }
 0x1da   : > { %v1599_v29 = vpop.eup %1598 }
 0x1db   : > { %562 = vst.msk [vmem:[#allocation4] sm:$0xff] %vm544_vm0, %v1599_v29  ;;  %v559_v30 = vpop.f32.mrf.mxu0 }
 0x1dc PF: > { %p1501_p10 = scmp.ne.s32.totalorder %s1746_s15, 1 }
 0x1de   : > { %565 = sbr.rel (%p1501_p10) target bundleno = 911 (0x38f), region = 56 }
 0x1e3   : > { %v803_v31 = vld [vmem:[#allocation4] sm:$0xff]  ;;  %vm845_vm1 = vcmask 261120   ;;  %v755_v32 = vld [vmem:[%s2444_s2] sm:$0xf]  ;;  %v756_v33 = vld [vmem:[%s2444_s2 + $0x4] sm:$0xf]  ;;  %v566_v45 = vlaneseq }
 0x1e4   : > { %v804_v34 = vpack.c.bf16 %v803_v31, %v803_v31  ;;  %v627_v35 = vld [vmem:[%s2443_s1] sm:$0xff]  ;;  %vm1765_vm2 = vmmov 1   ;;  %v1766_v36 = vmov 0   ;;  %vm1767_vm4 = vmmov 0   ;;  %v769_v26 = vld [vmem:[%s2444_s2 + $0x38] sm:$0xf] }
 0x1e5   : > { %vm771_vm3 = vmpackc.low %vm1765_vm2, %vm1765_vm2  ;;  %1600 = vset.pattern.permute.xlu0 %v1766_v36  ;;  %v1768_v40 = vmov 0.0   ;;  %v1944_v46 = vand.u32 127, %v566_v45  ;;  %vm938_vm7 = vcmask 64512   ;;  %v770_v27 = vld [vmem:[%s2444_s2 + $0x3c] sm:$0xf]  ;;  %v572_v38 = vshrl.u32 %v566_v45, 7 }
 0x1e6   : > { %v871_v37 = vsel %vm845_vm1, %v804_v34, 0  ;;  %vm1930_vm5 = vmpackc.low %vm1767_vm4, %vm1767_vm4  ;;  %v1934_v39 = vsel %vm771_vm3, %v755_v32, 0  ;;  %644 = vperm.xlu0 %1600, %v627_v35   ;;  %985 = vadd.xlane.f32.xlu1 %v1768_v40  ;;  %v1769_v45 = vmov 1.0|1.0  }
 0x1e7   : > { %880 = vmatpush.bf16.xpose.msra.mxu0 %v871_v37  ;;  %v1938_v41 = vsel %vm1930_vm5, %v756_v33, 0  ;;  %v821_v42 = vunpack.c.l.b16 %v1934_v39  ;;  %979 = vadd.xlane.f32.xlu2 %v1768_v40 }
 0x1e8   : > { %v822_v43 = vunpack.c.l.b16 %v1938_v41  ;;  %1537 = vmatpush.bf16.xpose.msra.mxu2 %v871_v37  ;;  %1538 = vmatpush.bf16.xpose.msra.mxu3 %v871_v37 }
 0x1ea   : > { %v837_v44 = vpack.c.b16 %v822_v43, %v821_v42 }
 0x1ee   : > { %1503 = vmatmul.msk.bf16.vlgmr.msra.gmra.mxu0 %vm845_vm1, %v837_v44  ;;  %976 = vadd.xlane.f32.xlu1 %v1768_v40 }
 0x1ef   : > { %970 = vadd.xlane.f32.xlu2 %v1768_v40 }
 0x1f6   : > { %973 = vadd.xlane.f32.xlu1 %v1768_v40 }
 0x1f7   : > { %964 = vadd.xlane.f32.xlu2 %v1768_v40 }
 0x1fe   : > { %967 = vadd.xlane.f32.xlu1 %v1768_v40 }
 0x1ff   : > { %958 = vadd.xlane.f32.xlu2 %v1768_v40 }
 0x206   : > { %961 = vadd.xlane.f32.xlu1 %v1768_v40 }
 0x207   : > { %952 = vadd.xlane.f32.xlu2 %v1768_v40 }
 0x20e   : > { %955 = vadd.xlane.f32.xlu1 %v1768_v40 }
 0x20f   : > { %946 = vadd.xlane.f32.xlu2 %v1768_v40 }
 0x210   : > { %982 = vadd.xlane.f32.xlu0 %v1768_v40 }
 0x216   : > { %949 = vadd.xlane.f32.xlu1 %v1768_v40 }
 0x218   : > { %943 = vadd.xlane.f32.xlu0 %v1768_v40 }
 0x258   : > { %v645_v47 = vpop.permute.xlu0 %644 }
 0x259   : > { %vm691_vm6 = vcmp.eq.s32.totalorder %v1944_v46, %v645_v47  ;;  %v986_v50 = vpop.xlane.xlu1 %985  ;;  %v2006_v47 = vsel %vm1930_vm5, %v769_v26, 0 }
 0x25a   : > { %v1526_v52 = vmul.f32 -1.442695, %v986_v50  ;;  %v980_v54 = vpop.xlane.xlu2 %979 }
 0x25b   : > { %v1524_v56 = vmul.f32 -1.442695, %v980_v54 }
 0x25c   : > { %1602 = vpow2.f32 %v1526_v52 }
 0x25d   : > { %1604 = vpow2.f32 %v1524_v56 }
 0x261   : > { %v977_v55 = vpop.xlane.xlu1 %976 }
 0x262   : > { %v1523_v57 = vmul.f32 -1.442695, %v977_v55  ;;  %v1603_v58 = vpop.eup %1602  ;;  %v971_v60 = vpop.xlane.xlu2 %970 }
 0x263   : > { %v1947_v59 = vadd.f32 1.0, %v1603_v58  ;;  %v1605_v62 = vpop.eup %1604  ;;  %v1521_v63 = vmul.f32 -1.442695, %v971_v60 }
 0x264   : > { %1606 = vpow2.f32 %v1523_v57  ;;  %v1950_v1 = vadd.f32 1.0, %v1605_v62 }
 0x265   : > { %1608 = vrcp.f32 %v1947_v59  ;;  %vm1281_vm8 = vweird.f32 %v1947_v59  ;;  %v1285_v31 = vand.u32 2147483647, %v1947_v59  ;;  %v1287_v43 = vand.u32 2147483648, %v1947_v59 }
 0x266   : > { %1610 = vpow2.f32 %v1521_v63 }
 0x267   : > { %1612 = vrcp.f32 %v1950_v1  ;;  %vm1286_vm11 = vcmp.eq.f32.partialorder %v1285_v31, 8.507059e+37  ;;  %v1288_v52 = vor.u32 1.1754944e-38, %v1287_v43 }
 0x269   : > { %v974_v61 = vpop.xlane.xlu1 %973 }
 0x26a   : > { %v1607_v0 = vpop.eup %1606  ;;  %v1522_v2 = vmul.f32 -1.442695, %v974_v61  ;;  %v965_v7 = vpop.xlane.xlu2 %964 }
 0x26b   : > { %v882_v48 = vpop.f32.mrf.mxu0  ;;  %v1952_v4 = vadd.f32 1.0, %v1607_v0  ;;  %v1956_v6 = vpop.eup %1608  ;;  %v1519_v10 = vmul.f32 -1.442695, %v965_v7  ;;  %v1337_v0 = vunpack.c.l.bf16 %v2006_v47 }
 0x26c   : > { %v922_v49 = vsel %vm691_vm6, %v882_v48, 0.0  ;;  %v1611_v9 = vpop.eup %1610  ;;  %v1277_v15 = vmul.f32 %v1956_v6, %v1947_v59  ;;  %vm1282_vm9 = vweird.f32 %v1956_v6  ;;  %v2010_v48 = vsel %vm1930_vm5, %v770_v27, 0 }
 0x26d   : > { %v939_v51 = vsel %vm938_vm7, %v922_v49, 0.0  ;;  %1614 = vrcp.f32 %v1952_v4  ;;  %v1958_v12 = vpop.eup %1612  ;;  %v1960_v13 = vadd.f32 1.0, %v1611_v9  ;;  %vm2016_vm10 = vmor %vm1281_vm8, %vm1282_vm9  ;;  %vm1236_vm15 = vweird.f32 %v1952_v4 }
 0x26e   : > { %940 = vadd.xlane.f32.xlu2 %v939_v51  ;;  %1616 = vpow2.f32 %v1522_v2  ;;  %v1968_v17 = vmul.f32 %v1958_v12, %v1950_v1  ;;  %v1278_v22 = vsub.f32 1.0, %v1277_v15  ;;  %v767_v2 = vld [vmem:[%s2444_s2 + $0x30] sm:$0xf]  ;;  %vm1251_vm6 = vweird.f32 %v1950_v1 }
 0x26f   : > { %vm1252_vm7 = vweird.f32 %v1958_v12 }
 0x270   : > { %v1248_v23 = vsub.f32 1.0, %v1968_v17  ;;  %v1279_v36 = vmul.f32 %v1956_v6, %v1278_v22  ;;  %vm2103_vm8 = vmor %vm1251_vm6, %vm1252_vm7 }
 0x271   : > { %v968_v8 = vpop.xlane.xlu1 %967 }
 0x272   : > { %v1520_v11 = vmul.f32 -1.442695, %v968_v8  ;;  %v959_v24 = vpop.xlane.xlu2 %958  ;;  %v1280_v51 = vadd.f32 %v1956_v6, %v1279_v36 }
 0x273   : > { %v884_v53 = vpop.f32.mrf.mxu0  ;;  %v1962_v14 = vpop.eup %1614  ;;  %v1517_v29 = vmul.f32 -1.442695, %v959_v24  ;;  %v1240_v24 = vand.u32 2147483647, %v1952_v4 }
 0x274   : > { %v1617_v16 = vpop.eup %1616  ;;  %v1232_v21 = vmul.f32 %v1962_v14, %v1952_v4  ;;  %v1284_v58 = vsel %vm2016_vm10, %v1956_v6, %v1280_v51  ;;  %v768_v6 = vld [vmem:[%s2444_s2 + $0x34] sm:$0xf]  ;;  %vm1237_vm0 = vweird.f32 %v1962_v14  ;;  %vm1206_vm10 = vweird.f32 %v1960_v13 }
 0x275   : > { %v1971_v18 = vadd.f32 1.0, %v1617_v16  ;;  %v1289_v63 = vsel %vm1286_vm11, %v1288_v52, %v1284_v58  ;;  %vm2058_vm2 = vmor %vm1236_vm15, %vm1237_vm0  ;;  %vm2092_vm4 = vcmp.eq.f32.partialorder %v1240_v24, 8.507059e+37  ;;  %v1257_v52 = vand.u32 2147483648, %v1950_v1 }
 0x276   : > { %v1233_v40 = vsub.f32 1.0, %v1232_v21  ;;  %v1306_v8 = vpack.c.bf16 %v1289_v63, %v1289_v63  ;;  %v2056_v21 = vsel %vm1930_vm5, %v767_v2, 0 }
 0x278   : > { %v1234_v59 = vmul.f32 %v1962_v14, %v1233_v40  ;;  %v1242_v40 = vand.u32 2147483648, %v1952_v4  ;;  %v1255_v4 = vand.u32 2147483647, %v1950_v1 }
 0x279   : > { %v962_v25 = vpop.xlane.xlu1 %961 }
 0x27a   : > { %v1518_v30 = vmul.f32 -1.442695, %v962_v25  ;;  %v953_v61 = vpop.xlane.xlu2 %952  ;;  %v1235_v9 = vadd.f32 %v1962_v14, %v1234_v59  ;;  %v1243_v51 = vor.u32 1.1754944e-38, %v1242_v40  ;;  %vm1256_vm9 = vcmp.eq.f32.partialorder %v1255_v4, 8.507059e+37 }
 0x281   : > { %v956_v62 = vpop.xlane.xlu1 %955 }
 0x282   : > { %v1516_v7 = vmul.f32 -1.442695, %v956_v62 }
 0x283   : > { %v983_v5 = vpop.xlane.xlu0 %982 }
 0x284   : > { %v1525_v3 = vmul.f32 -1.442695, %v983_v5 }
 0x286   : > { %1618 = vpow2.f32 %v1525_v3  ;;  %v1515_v3 = vmul.f32 -1.442695, %v953_v61 }
 0x287   : > { %1620 = vpow2.f32 %v1519_v10 }
 0x288   : > { %1622 = vrcp.f32 %v1960_v13 }
 0x289   : > { %1624 = vpow2.f32 %v1520_v11 }
 0x28a   : > { %1626 = vrcp.f32 %v1971_v18 }
 0x28c   : > { %v1619_v19 = vpop.eup %1618 }
 0x28d   : > { %v1973_v20 = vadd.f32 1.0, %v1619_v19  ;;  %v1621_v28 = vpop.eup %1620  ;;  %v1338_v19 = vunpack.c.l.bf16 %v2010_v48 }
 0x28e   : > { %v1989_v32 = vpop.eup %1622  ;;  %v1991_v33 = vadd.f32 1.0, %v1621_v28  ;;  %v2069_v28 = vsel %vm1930_vm5, %v768_v6, 0  ;;  %v1335_v6 = vunpack.c.l.bf16 %v2056_v21 }
 0x28f   : > { %1628 = vrcp.f32 %v1973_v20  ;;  %v1270_v34 = vand.u32 2147483647, %v1973_v20  ;;  %v1272_v35 = vand.u32 2147483648, %v1973_v20  ;;  %v1625_v37 = vpop.eup %1624  ;;  %v1998_v42 = vmul.f32 %v1989_v32, %v1960_v13 }
 0x290   : > { %1630 = vpow2.f32 %v1517_v29  ;;  %v2002_v44 = vadd.f32 1.0, %v1625_v37  ;;  %v2020_v50 = vpop.eup %1626  ;;  %vm1266_vm12 = vweird.f32 %v1973_v20  ;;  %v1239_v37 = vsel %vm2058_vm2, %v1962_v14, %v1235_v9 }
 0x291   : > { %1632 = vrcp.f32 %v1991_v33  ;;  %vm2025_vm13 = vcmp.eq.f32.partialorder %v1270_v34, 8.507059e+37  ;;  %v1273_v54 = vor.u32 1.1754944e-38, %v1272_v35  ;;  %v1203_v56 = vsub.f32 1.0, %v1998_v42 }
 0x292   : > { %1634 = vpow2.f32 %v1518_v30  ;;  %v2032_v57 = vmul.f32 %v2020_v50, %v1971_v18  ;;  %v1322_v34 = vunpack.c.l.bf16 %v1306_v8  ;;  %v1244_v63 = vsel %vm2092_vm4, %v1243_v51, %v1239_v37  ;;  %v766_v51 = vld [vmem:[%s2444_s2 + $0x2c] sm:$0xf] }
 0x293   : > { %1636 = vrcp.f32 %v2002_v44  ;;  %vm1207_vm11 = vweird.f32 %v1989_v32  ;;  %vm1222_vm15 = vweird.f32 %v2020_v50 }
 0x294   : > { %1638 = vpow2.f32 %v1515_v3  ;;  %v1218_v26 = vsub.f32 1.0, %v2032_v57  ;;  %v950_v3 = vpop.xlane.xlu1 %949 }
 0x295   : > { %v1629_v55 = vpop.eup %1628  ;;  %v1514_v24 = vmul.f32 -1.442695, %v950_v3 }
 0x296   : > { %v1262_v60 = vmul.f32 %v1629_v55, %v1973_v20  ;;  %vm1267_vm14 = vweird.f32 %v1629_v55  ;;  %v1631_v5 = vpop.eup %1630  ;;  %v1249_v20 = vmul.f32 %v1958_v12, %v1248_v23  ;;  %v1354_v23 = vmul.f32 %v1338_v19, %v1322_v34 }
 0x297   : > { %v2047_v10 = vpop.eup %1632  ;;  %v2049_v11 = vadd.f32 1.0, %v1631_v5  ;;  %vm2080_vm3 = vmor %vm1266_vm12, %vm1267_vm14  ;;  %v1303_v5 = vpack.c.bf16 %v1244_v63, %v1244_v63  ;;  %v1336_v19 = vunpack.c.l.bf16 %v2069_v28  ;;  %v1219_v14 = vmul.f32 %v2020_v50, %v1218_v26 }
 0x298   : > { %v1263_v15 = vsub.f32 1.0, %v1262_v60  ;;  %v1635_v16 = vpop.eup %1634  ;;  %v2073_v29 = vmul.f32 %v2047_v10, %v1991_v33  ;;  %v1250_v59 = vadd.f32 %v1958_v12, %v1249_v20  ;;  %v947_v60 = vpop.xlane.xlu2 %946  ;;  %v1204_v20 = vmul.f32 %v1989_v32, %v1203_v56  ;;  %vm2151_vm12 = vmor %vm1206_vm10, %vm1207_vm11 }
 0x299   : > { %v2063_v25 = vpop.eup %1636  ;;  %1640 = vrcp.f32 %v2049_v11  ;;  %v2075_v30 = vadd.f32 1.0, %v1635_v16  ;;  %v1513_v9 = vmul.f32 -1.442695, %v947_v60  ;;  %v1319_v16 = vunpack.c.l.bf16 %v1303_v5 }
 0x29a   : > { %v1264_v27 = vmul.f32 %v1629_v55, %v1263_v15  ;;  %1642 = vpow2.f32 %v1516_v7  ;;  %v2086_v35 = vmul.f32 %v2063_v25, %v2002_v44  ;;  %v1639_v58 = vpop.eup %1638  ;;  %v1254_v53 = vsel %vm2103_vm8, %v1958_v12, %v1250_v59 }
 0x29b   : > { %1644 = vrcp.f32 %v2075_v30  ;;  %v2115_v61 = vadd.f32 1.0, %v1639_v58  ;;  %v1173_v31 = vsub.f32 1.0, %v2073_v29  ;;  %v1351_v43 = vmul.f32 %v1335_v6, %v1319_v16 }
 0x29c   : > { %v1265_v36 = vadd.f32 %v1629_v55, %v1264_v27  ;;  %v1188_v34 = vsub.f32 1.0, %v2086_v35  ;;  %v1212_v56 = vand.u32 2147483648, %v1960_v13  ;;  %v1205_v58 = vadd.f32 %v1989_v32, %v1204_v20 }
 0x29d   : > { %1646 = vrcp.f32 %v2115_v61  ;;  %v1225_v60 = vand.u32 2147483647, %v1971_v18  ;;  %vm1177_vm4 = vweird.f32 %v2047_v10  ;;  %vm1191_vm8 = vweird.f32 %v2002_v44 }
 0x29e   : > { %v1269_v49 = vsel %vm2080_vm3, %v1629_v55, %v1265_v36  ;;  %v1213_v26 = vor.u32 1.1754944e-38, %v1212_v56  ;;  %vm1176_vm3 = vweird.f32 %v1991_v33  ;;  %v764_v56 = vld [vmem:[%s2444_s2 + $0x24] sm:$0xf] }
 0x29f   : > { %v1274_v17 = vsel %vm2025_vm13, %v1273_v54, %v1269_v49  ;;  %v2113_v55 = vpop.eup %1640  ;;  %v1258_v54 = vor.u32 1.1754944e-38, %v1257_v52  ;;  %v765_v49 = vld [vmem:[%s2444_s2 + $0x28] sm:$0xf]  ;;  %vm1221_vm13 = vweird.f32 %v1971_v18  ;;  %vm1226_vm2 = vcmp.eq.f32.partialorder %v1225_v60, 8.507059e+37  ;;  %vm2229_vm6 = vmor %vm1176_vm3, %vm1177_vm4 }
 0x2a0   : > { %v1305_v62 = vpack.c.bf16 %v1274_v17, %v1274_v17  ;;  %v1643_v1 = vpop.eup %1642  ;;  %v2121_v2 = vmul.f32 %v2113_v55, %v2049_v11  ;;  %vm2175_vm0 = vmor %vm1221_vm13, %vm1222_vm15  ;;  %v2182_v63 = vsel %vm1930_vm5, %v765_v49, 0  ;;  %v1189_v17 = vmul.f32 %v2063_v25, %v1188_v34 }
 0x2a1   : > { %v2126_v7 = vadd.f32 1.0, %v1643_v1  ;;  %v1259_v15 = vsel %vm1256_vm9, %v1258_v54, %v1254_v53  ;;  %v2134_v27 = vpop.eup %1644  ;;  %v2186_v1 = vsel %vm1930_vm5, %v766_v51, 0  ;;  %v1209_v53 = vsel %vm2151_vm12, %v1989_v32, %v1205_v58 }
 0x2a2   : > { %v1321_v8 = vunpack.c.l.bf16 %v1305_v62  ;;  %v1304_v22 = vpack.c.bf16 %v1259_v15, %v1259_v15  ;;  %v1143_v36 = vsub.f32 1.0, %v2121_v2  ;;  %v2164_v52 = vmul.f32 %v2134_v27, %v2075_v30 }
 0x2a3   : > { %1648 = vrcp.f32 %v2126_v7  ;;  %v2160_v4 = vpop.eup %1646  ;;  %v1227_v54 = vand.u32 2147483648, %v1971_v18  ;;  %v763_v18 = vld [vmem:[%s2444_s2 + $0x20] sm:$0xf]  ;;  %v1180_v51 = vand.u32 2147483647, %v1991_v33  ;;  %vm1192_vm9 = vweird.f32 %v2063_v25 }
 0x2a4   : > { %v1353_v12 = vmul.f32 %v1337_v0, %v1321_v8  ;;  %1650 = vpow2.f32 %v1513_v9  ;;  %v1320_v40 = vunpack.c.l.bf16 %v1304_v22  ;;  %v1210_v0 = vand.u32 2147483647, %v1960_v13  ;;  %vm2250_vm10 = vmor %vm1191_vm8, %vm1192_vm9 }
 0x2a5   : > { %1652 = vpow2.f32 %v1514_v24  ;;  %v1158_v9 = vsub.f32 1.0, %v2164_v52  ;;  %v1228_v16 = vor.u32 1.1754944e-38, %v1227_v54  ;;  %vm2237_vm7 = vcmp.eq.f32.partialorder %v1180_v51, 8.507059e+37 }
 0x2a6   : > { %v1362_v37 = vpack.c.bf16 %v1354_v23, %v1353_v12  ;;  %v1352_v29 = vmul.f32 %v1336_v19, %v1320_v40  ;;  %vm2167_vm14 = vcmp.eq.f32.partialorder %v1210_v0, 8.507059e+37  ;;  %v1220_v23 = vadd.f32 %v2020_v50, %v1219_v14  ;;  %v944_v19 = vpop.xlane.xlu0 %943 }
 0x2a7   : > { %v1214_v8 = vsel %vm2167_vm14, %v1213_v26, %v1209_v53  ;;  %v2207_v12 = vmul.f32 %v2160_v4, %v2115_v61  ;;  %v1334_v40 = vunpack.c.l.bf16 %v2186_v1  ;;  %v1512_v20 = vmul.f32 -1.442695, %v944_v19 }
 0x2a8   : > { %1364 = vmatpush.bf16.msra.mxu1 %v1362_v37  ;;  %v1361_v57 = vpack.c.bf16 %v1352_v29, %v1351_v43  ;;  %v1224_v6 = vsel %vm2175_vm0, %v2020_v50, %v1220_v23  ;;  %v1301_v32 = vpack.c.bf16 %v1214_v8, %v1214_v8  ;;  %v1333_v50 = vunpack.c.l.bf16 %v2182_v63 }
 0x2a9   : > { %v2172_v13 = vpop.eup %1648  ;;  %v1229_v24 = vsel %vm1226_vm2, %v1228_v16, %v1224_v6  ;;  %v2219_v0 = vsel %vm1930_vm5, %v763_v18, 0  ;;  %v1174_v29 = vmul.f32 %v2047_v10, %v1173_v31  ;;  %v1182_v31 = vand.u32 2147483648, %v1991_v33  ;;  %v762_v6 = vld [vmem:[%s2444_s2 + $0x1c] sm:$0xf] }
 0x2aa   : > { %v1651_v62 = vpop.eup %1650  ;;  %v2211_v22 = vmul.f32 %v2172_v13, %v2126_v7  ;;  %v1317_v37 = vunpack.c.l.bf16 %v1301_v32  ;;  %v1302_v43 = vpack.c.bf16 %v1229_v24, %v1229_v24  ;;  %v1195_v26 = vand.u32 2147483647, %v2002_v44 }
 0x2ab   : > { %v1653_v5 = vpop.eup %1652  ;;  %v2192_v3 = vadd.f32 1.0, %v1651_v62  ;;  %v1175_v14 = vadd.f32 %v2047_v10, %v1174_v29  ;;  %v1183_v35 = vor.u32 1.1754944e-38, %v1182_v31  ;;  %v1190_v34 = vadd.f32 %v2063_v25, %v1189_v17  ;;  %v761_v62 = vld [vmem:[%s2444_s2 + $0x18] sm:$0xf] }
 0x2ac   : > { %1365 = vmatpush.bf16.msra.mxu1 %v1361_v57  ;;  %v2200_v15 = vadd.f32 1.0, %v1653_v5  ;;  %v1349_v49 = vmul.f32 %v1333_v50, %v1317_v37  ;;  %v1318_v42 = vunpack.c.l.bf16 %v1302_v43  ;;  %v1113_v54 = vsub.f32 1.0, %v2207_v12 }
 0x2ad   : > { %1654 = vrcp.f32 %v2192_v3  ;;  %v1179_v33 = vsel %vm2229_vm6, %v2047_v10, %v1175_v14  ;;  %v1128_v5 = vsub.f32 1.0, %v2211_v22  ;;  %v2263_v10 = vsel %vm1930_vm5, %v764_v56, 0 }
 0x2ae   : > { %1656 = vrcp.f32 %v2200_v15  ;;  %v1350_v59 = vmul.f32 %v1334_v40, %v1318_v42  ;;  %v1197_v8 = vand.u32 2147483648, %v2002_v44  ;;  %v1184_v32 = vsel %vm2237_vm7, %v1183_v35, %v1179_v33 }
 0x2af   : > { %v1194_v19 = vsel %vm2250_vm10, %v2063_v25, %v1190_v34  ;;  %vm1196_vm11 = vcmp.eq.f32.partialorder %v1195_v26, 8.507059e+37  ;;  %1658 = vpow2.f32 %v1512_v20  ;;  %v1299_v12 = vpack.c.bf16 %v1184_v32, %v1184_v32 }
 0x2b0   : > { %v1360_v16 = vpack.c.bf16 %v1350_v59, %v1349_v49  ;;  %v1198_v18 = vor.u32 1.1754944e-38, %v1197_v8  ;;  %v1331_v50 = vunpack.c.l.bf16 %v2219_v0  ;;  %v793_v37 = vsel %vm1930_vm5, %v761_v62, 0 }
 0x2b1   : > { %v2287_v25 = vsel %vm1930_vm5, %v762_v6, 0  ;;  %v1315_v43 = vunpack.c.l.bf16 %v1299_v12  ;;  %v1332_v20 = vunpack.c.l.bf16 %v2263_v10  ;;  %v827_v29 = vunpack.c.l.b16 %v793_v37  ;;  %v760_v12 = vld [vmem:[%s2444_s2 + $0x14] sm:$0xf] }
 0x2b2   : > { %1366 = vmatpush.bf16.msra.mxu1 %v1360_v16  ;;  %v1199_v40 = vsel %vm1196_vm11, %v1198_v18, %v1194_v19  ;;  %v828_v51 = vunpack.c.l.b16 %v2287_v25  ;;  %v1144_v42 = vmul.f32 %v2113_v55, %v1143_v36  ;;  %vm1146_vm12 = vweird.f32 %v2049_v11  ;;  %v759_v18 = vld [vmem:[%s2444_s2 + $0x10] sm:$0xf] }
 0x2b3   : > { %v2244_v23 = vpop.eup %1654  ;;  %v1300_v49 = vpack.c.bf16 %v1199_v40, %v1199_v40  ;;  %v1347_v56 = vmul.f32 %v1331_v50, %v1315_v43  ;;  %vm1147_vm13 = vweird.f32 %v2113_v55  ;;  %v1150_v14 = vand.u32 2147483647, %v2049_v11 }
 0x2b4   : > { %v2257_v53 = vpop.eup %1656  ;;  %v2277_v44 = vmul.f32 %v2244_v23, %v2192_v3  ;;  %v1152_v58 = vand.u32 2147483648, %v2049_v11  ;;  %v840_v17 = vpack.c.b16 %v828_v51, %v827_v29  ;;  %v1145_v57 = vadd.f32 %v2113_v55, %v1144_v42  ;;  %vm2299_vm14 = vmor %vm1146_vm12, %vm1147_vm13 }
 0x2b5   : > { %v2281_v24 = vmul.f32 %v2257_v53, %v2200_v15  ;;  %v1316_v31 = vunpack.c.l.bf16 %v1300_v49  ;;  %v1159_v2 = vmul.f32 %v2134_v27, %v1158_v9  ;;  %v2306_v36 = vpop.eup %1658  ;;  %vm1151_vm15 = vcmp.eq.f32.partialorder %v1150_v14, 8.507059e+37 }
 0x2b6   : > { %v1153_v59 = vor.u32 1.1754944e-38, %v1152_v58  ;;  %vm1161_vm0 = vweird.f32 %v2075_v30  ;;  %vm1162_vm2 = vweird.f32 %v2134_v27  ;;  %1506 = vmatmul.msk.bf16.vlgmr.msra.gmra.mxu2 %vm845_vm1, %v840_v17  ;;  %v1149_v33 = vsel %vm2299_vm14, %v2113_v55, %v1145_v57 }
 0x2b7   : > { %v1348_v11 = vmul.f32 %v1332_v20, %v1316_v31  ;;  %v1160_v35 = vadd.f32 %v2134_v27, %v1159_v2  ;;  %vm2315_vm3 = vmor %vm1161_vm0, %vm1162_vm2  ;;  %v1165_v9 = vand.u32 2147483647, %v2075_v30  ;;  %v1083_v34 = vsub.f32 1.0, %v2277_v44 }
 0x2b8   : > { %v1098_v60 = vsub.f32 1.0, %v2281_v24  ;;  %v1154_v62 = vsel %vm1151_vm15, %v1153_v59, %v1149_v33  ;;  %v1167_v8 = vand.u32 2147483648, %v2075_v30  ;;  %v1329_v16 = vunpack.c.l.bf16 %v793_v37 }
 0x2b9   : > { %v1359_v6 = vpack.c.bf16 %v1348_v11, %v1347_v56  ;;  %v1164_v55 = vsel %vm2315_vm3, %v2134_v27, %v1160_v35  ;;  %vm1166_vm4 = vcmp.eq.f32.partialorder %v1165_v9, 8.507059e+37  ;;  %v1297_v19 = vpack.c.bf16 %v1154_v62, %v1154_v62 }
 0x2ba   : > { %v1168_v32 = vor.u32 1.1754944e-38, %v1167_v8  ;;  %v1114_v50 = vmul.f32 %v2160_v4, %v1113_v54  ;;  %vm1116_vm6 = vweird.f32 %v2115_v61  ;;  %v1330_v30 = vunpack.c.l.bf16 %v2287_v25 }
 0x2bb   : > { %1367 = vmatpush.bf16.msra.mxu1 %v1359_v6  ;;  %v2337_v27 = vsel %vm1930_vm5, %v759_v18, 0  ;;  %v2341_v44 = vsel %vm1930_vm5, %v760_v12, 0  ;;  %vm1117_vm7 = vweird.f32 %v2160_v4  ;;  %v1313_v40 = vunpack.c.l.bf16 %v1297_v19 }
 0x2bc   : > { %v1169_v37 = vsel %vm1166_vm4, %v1168_v32, %v1164_v55  ;;  %v1115_v43 = vadd.f32 %v2160_v4, %v1114_v50  ;;  %vm2345_vm8 = vmor %vm1116_vm6, %vm1117_vm7  ;;  %v1120_v25 = vand.u32 2147483647, %v2115_v61  ;;  %v1122_v29 = vand.u32 2147483648, %v2115_v61 }
 0x2bd   : > { %v1298_v20 = vpack.c.bf16 %v1169_v37, %v1169_v37  ;;  %v1129_v49 = vmul.f32 %v2172_v13, %v1128_v5  ;;  %vm1131_vm9 = vweird.f32 %v2126_v7  ;;  %v1345_v51 = vmul.f32 %v1329_v16, %v1313_v40 }
 0x2be   : > { %v1119_v42 = vsel %vm2345_vm8, %v2160_v4, %v1115_v43  ;;  %vm1121_vm10 = vcmp.eq.f32.partialorder %v1120_v25, 8.507059e+37  ;;  %vm1132_vm11 = vweird.f32 %v2172_v13  ;;  %v1123_v14 = vor.u32 1.1754944e-38, %v1122_v29 }
 0x2bf   : > { %v1314_v56 = vunpack.c.l.bf16 %v1298_v20  ;;  %v1130_v58 = vadd.f32 %v2172_v13, %v1129_v49  ;;  %vm2360_vm12 = vmor %vm1131_vm9, %vm1132_vm11  ;;  %v1135_v22 = vand.u32 2147483647, %v2126_v7  ;;  %v1137_v5 = vand.u32 2147483648, %v2126_v7  ;;  %v757_v7 = vld [vmem:[%s2444_s2 + $0x8] sm:$0xf] }
 0x2c0   : > { %v1327_v31 = vunpack.c.l.bf16 %v2337_v27  ;;  %v1328_v17 = vunpack.c.l.bf16 %v2341_v44  ;;  %v829_v4 = vunpack.c.l.b16 %v2219_v0  ;;  %v1124_v26 = vsel %vm1121_vm10, %v1123_v14, %v1119_v42  ;;  %v758_v0 = vld [vmem:[%s2444_s2 + $0xc] sm:$0xf] }
 0x2c1   : > { %v1346_v57 = vmul.f32 %v1330_v30, %v1314_v56  ;;  %v1134_v2 = vsel %vm2360_vm12, %v2172_v13, %v1130_v58  ;;  %vm1136_vm13 = vcmp.eq.f32.partialorder %v1135_v22, 8.507059e+37  ;;  %v1138_v59 = vor.u32 1.1754944e-38, %v1137_v5 }
 0x2c2   : > { %v1295_v11 = vpack.c.bf16 %v1124_v26, %v1124_v26  ;;  %v830_v33 = vunpack.c.l.b16 %v2263_v10  ;;  %v833_v35 = vunpack.c.l.b16 %v2056_v21  ;;  %v834_v9 = vunpack.c.l.b16 %v2069_v28 }
 0x2c3   : > { %v1358_v52 = vpack.c.bf16 %v1346_v57, %v1345_v51  ;;  %v789_v13 = vsel %vm1930_vm5, %v757_v7, 0  ;;  %v790_v62 = vsel %vm1930_vm5, %v758_v0, 0  ;;  %v1139_v10 = vsel %vm1136_vm13, %v1138_v59, %v1134_v2 }
 0x2c4   : > { %v1311_v8 = vunpack.c.l.bf16 %v1295_v11  ;;  %v841_v21 = vpack.c.b16 %v830_v33, %v829_v4  ;;  %v1084_v6 = vmul.f32 %v2244_v23, %v1083_v34  ;;  %v1296_v55 = vpack.c.bf16 %v1139_v10, %v1139_v10 }
 0x2c5   : > { %1368 = vmatpush.bf16.msra.mxu1 %v1358_v52  ;;  %v843_v16 = vpack.c.b16 %v834_v9, %v833_v35  ;;  %vm1086_vm14 = vweird.f32 %v2192_v3  ;;  %vm1087_vm15 = vweird.f32 %v2244_v23  ;;  %v823_v28 = vunpack.c.l.b16 %v789_v13 }
 0x2c6   : > { %v1343_v32 = vmul.f32 %v1327_v31, %v1311_v8  ;;  %v824_v19 = vunpack.c.l.b16 %v790_v62  ;;  %v1085_v18 = vadd.f32 %v2244_v23, %v1084_v6  ;;  %vm2389_vm0 = vmor %vm1086_vm14, %vm1087_vm15  ;;  %v1312_v12 = vunpack.c.l.bf16 %v1296_v55  ;;  %1507 = vmatmul.msk.bf16.gmra.mxu2 %vm845_vm1, %v841_v21 }
 0x2c7   : > { %1509 = vmatmul.msk.bf16.vlgmr.msra.gmra.mxu3 %vm845_vm1, %v843_v16  ;;  %v1090_v34 = vand.u32 2147483647, %v2192_v3  ;;  %v1092_v50 = vand.u32 2147483648, %v2192_v3  ;;  %v1099_v30 = vmul.f32 %v2257_v53, %v1098_v60  ;;  %vm1101_vm5 = vweird.f32 %v2200_v15 }
 0x2c8   : > { %v838_v37 = vpack.c.b16 %v824_v19, %v823_v28  ;;  %v1089_v40 = vsel %vm2389_vm0, %v2244_v23, %v1085_v18  ;;  %vm1102_vm2 = vweird.f32 %v2257_v53  ;;  %v1344_v43 = vmul.f32 %v1328_v17, %v1312_v12  ;;  %v1601_v12 = vld [vmem:[%s2442_s0] ss:$0 sm:$0xff] }
 0x2c9   : > { %vm1091_vm3 = vcmp.eq.f32.partialorder %v1090_v34, 8.507059e+37  ;;  %v1093_v54 = vor.u32 1.1754944e-38, %v1092_v50  ;;  %v1100_v25 = vadd.f32 %v2257_v53, %v1099_v30  ;;  %vm1103_vm4 = vmor %vm1101_vm5, %vm1102_vm2  ;;  %v1105_v3 = vand.u32 2147483647, %v2200_v15 }
 0x2ca   : > { %1504 = vmatmul.msk.bf16.gmra.mxu0 %vm845_vm1, %v838_v37  ;;  %v1107_v24 = vand.u32 2147483648, %v2200_v15  ;;  %v1357_v60 = vpack.c.bf16 %v1344_v43, %v1343_v32  ;;  %v1325_v51 = vunpack.c.l.bf16 %v789_v13  ;;  %v1326_v58 = vunpack.c.l.bf16 %v790_v62 }
 0x2cb   : > { %v1094_v20 = vsel %vm1091_vm3, %v1093_v54, %v1089_v40  ;;  %v1104_v23 = vsel %vm1103_vm4, %v2257_v53, %v1100_v25  ;;  %vm1106_vm6 = vcmp.eq.f32.partialorder %v1105_v3, 8.507059e+37  ;;  %v831_v61 = vunpack.c.l.b16 %v2182_v63 }
 0x2cc   : > { %v1108_v29 = vor.u32 1.1754944e-38, %v1107_v24  ;;  %v1293_v49 = vpack.c.bf16 %v1094_v20, %v1094_v20  ;;  %1369 = vmatpush.bf16.msra.mxu1 %v1357_v60  ;;  %v832_v22 = vunpack.c.l.b16 %v2186_v1  ;;  %v1036_v5 = vadd.f32 1.0, %v2306_v36 }
 0x2cd   : > { %v835_v15 = vunpack.c.l.b16 %v2006_v47  ;;  %v836_v31 = vunpack.c.l.b16 %v2010_v48  ;;  %v825_v4 = vunpack.c.l.b16 %v2337_v27  ;;  %v826_v57 = vunpack.c.l.b16 %v2341_v44 }
 0x2ce   : > { %v1109_v42 = vsel %vm1106_vm6, %v1108_v29, %v1104_v23  ;;  %v1309_v56 = vunpack.c.l.bf16 %v1293_v49  ;;  %v842_v2 = vpack.c.b16 %v832_v22, %v831_v61  ;;  %1660 = vrcp.f32 %v1036_v5  ;;  %v1363_v61 = vld [vmem:[#allocation8] sm:$0xff] }
 0x2cf   : > { %v1294_v14 = vpack.c.bf16 %v1109_v42, %v1109_v42  ;;  %v844_v59 = vpack.c.b16 %v836_v31, %v835_v15  ;;  %v839_v63 = vpack.c.b16 %v826_v57, %v825_v4  ;;  %vm1071_vm7 = vweird.f32 %v1036_v5 }
 0x2d0   : > { %v1341_v17 = vmul.f32 %v1325_v51, %v1309_v56  ;;  %v1077_v7 = vand.u32 2147483648, %v1036_v5  ;;  %v1075_v52 = vand.u32 2147483647, %v1036_v5  ;;  %v1323_v37 = vunpack.c.l.bf16 %v1934_v39 }
 0x2d1   : > { %v1310_v53 = vunpack.c.l.bf16 %v1294_v14  ;;  %v1324_v40 = vunpack.c.l.bf16 %v1938_v41  ;;  %vm570_vm15 = vcmp.lt.s32.totalorder %v1944_v46, 8  ;;  %vm622_vm0 = vcmp.eq.s32.totalorder %v572_v38, %v1601_v12 }
 0x2d2   : > { %v1078_v13 = vor.u32 1.1754944e-38, %v1077_v7  ;;  %vm1076_vm10 = vcmp.eq.f32.partialorder %v1075_v52, 8.507059e+37  ;;  %vm623_vm5 = vmand %vm622_vm0, %vm570_vm15 }
 0x2d3   : > { %v1342_v26 = vmul.f32 %v1326_v58, %v1310_v53  ;;  %vm1527_vm2 = vmpackc.low %vm623_vm5, %vm623_vm5 }
 0x2d4   : > { %v1661_v47 = vpop.eup %1660 }
 0x2d5   : > { %v1356_v11 = vpack.c.bf16 %v1342_v26, %v1341_v17  ;;  %v1067_v36 = vmul.f32 %v1661_v47, %v1036_v5  ;;  %vm1072_vm8 = vweird.f32 %v1661_v47 }
 0x2d6   : > { %1508 = vmatmul.msk.bf16.gmra.mxu2 %vm845_vm1, %v842_v2  ;;  %vm1073_vm9 = vmor %vm1071_vm7, %vm1072_vm8 }
 0x2d7   : > { %1370 = vmatpush.bf16.msra.mxu1 %v1356_v11  ;;  %1510 = vmatmul.msk.bf16.gmra.mxu3 %vm845_vm1, %v844_v59  ;;  %v1068_v27 = vsub.f32 1.0, %v1067_v36 }
 0x2d9   : > { %v1069_v35 = vmul.f32 %v1661_v47, %v1068_v27 }
 0x2da   : > { %1505 = vmatmul.msk.bf16.gmra.mxu0 %vm845_vm1, %v839_v63 }
 0x2db   : > { %v1070_v0 = vadd.f32 %v1661_v47, %v1069_v35 }
 0x2dd   : > { %v1074_v10 = vsel %vm1073_vm9, %v1661_v47, %v1070_v0 }
 0x2de   : > { %v1079_v6 = vsel %vm1076_vm10, %v1078_v13, %v1074_v10 }
 0x2df   : > { %v1292_v28 = vpack.c.bf16 %v1079_v6, %v1079_v6 }
 0x2e1   : > { %v941_v1 = vpop.xlane.xlu2 %940  ;;  %v1308_v30 = vunpack.c.l.bf16 %v1292_v28 }
 0x2e2   : > { %v1511_v48 = vmul.f32 -1.442695, %v941_v1 }
 0x2e3   : > { %v1340_v25 = vmul.f32 %v1324_v40, %v1308_v30 }
 0x2e4   : > { %1662 = vpow2.f32 %v1511_v48 }
 0x2ea   : > { %v1663_v44 = vpop.eup %1662 }
 0x2eb   : > { %v1035_v33 = vadd.f32 1.0, %v1663_v44 }
 0x2ed   : > { %1664 = vrcp.f32 %v1035_v33  ;;  %v1062_v21 = vand.u32 2147483648, %v1035_v33  ;;  %v1060_v16 = vand.u32 2147483647, %v1035_v33  ;;  %vm1056_vm12 = vweird.f32 %v1035_v33 }
 0x2ef   : > { %v1063_v19 = vor.u32 1.1754944e-38, %v1062_v21  ;;  %vm1061_vm14 = vcmp.eq.f32.partialorder %v1060_v16, 8.507059e+37 }
 0x2f3   : > { %v1665_v9 = vpop.eup %1664 }
 0x2f4   : > { %v1052_v62 = vmul.f32 %v1665_v9, %v1035_v33  ;;  %vm1057_vm11 = vweird.f32 %v1665_v9 }
 0x2f5   : > { %vm1058_vm13 = vmor %vm1056_vm12, %vm1057_vm11 }
 0x2f6   : > { %v1053_v8 = vsub.f32 1.0, %v1052_v62 }
 0x2f8   : > { %v1054_v55 = vmul.f32 %v1665_v9, %v1053_v8 }
 0x2fa   : > { %v1055_v32 = vadd.f32 %v1665_v9, %v1054_v55 }
 0x2fc   : > { %v1059_v18 = vsel %vm1058_vm13, %v1665_v9, %v1055_v32 }
 0x2fd   : > { %v1064_v34 = vsel %vm1061_vm14, %v1063_v19, %v1059_v18 }
 0x2fe   : > { %v1291_v50 = vpack.c.bf16 %v1064_v34, %v1064_v34 }
 0x300   : > { %v1307_v43 = vunpack.c.l.bf16 %v1291_v50 }
 0x302   : > { %v1339_v54 = vmul.f32 %v1323_v37, %v1307_v43 }
 0x304   : > { %v1355_v3 = vpack.c.bf16 %v1340_v25, %v1339_v54 }
 0x306   : > { %1371 = vmatpush.bf16.msra.mxu1 %v1355_v3 }
 0x309   : > { %1528 = vmatmul.msk.bf16.vlgmr.msra.gmra.mxu1 %vm1527_vm2, %v1769_v45 }
 0x339   : > { %v897_v24 = vpop.f32.mrf.mxu2 }
 0x341   : > { %v899_v60 = vpop.f32.mrf.mxu2 }
 0x347   : > { %v887_v20 = vpop.f32.mrf.mxu0 }
 0x349   : > { %v902_v23 = vpop.f32.mrf.mxu2 }
 0x34a   : > { %v912_v29 = vpop.f32.mrf.mxu3 }
 0x34f   : > { %v889_v39 = vpop.f32.mrf.mxu0 }
 0x351   : > { %v904_v49 = vpop.f32.mrf.mxu2 }
 0x352   : > { %v914_v41 = vpop.f32.mrf.mxu3 }
 0x357   : > { %v892_v51 = vpop.f32.mrf.mxu0 }
 0x359   : > { %v907_v42 = vpop.f32.mrf.mxu2 }
 0x35a   : > { %v917_v46 = vpop.f32.mrf.mxu3 }
 0x35f   : > { %v894_v56 = vpop.f32.mrf.mxu0 }
 0x361   : > { %v909_v14 = vpop.f32.mrf.mxu2 }
 0x362   : > { %v919_v58 = vpop.f32.mrf.mxu3 }
 0x386   : > { %v1373_v22 = vpop.f32.mrf.mxu1 }
 0x387   : > { %v1377_v5 = vadd.f32 %v1373_v22, %v1363_v61 }
 0x389   : > { %1378 = vst.msk [vmem:[#allocation8] sm:$0xff] %vm845_vm1, %v1377_v5 }
 0x38e   : > { %v1375_v15 = vpop.f32.mrf.mxu1 }
 0x38f PF: > { %p1553_p11 = scmp.eq.s32.totalorder %s1478_s18, 1  ;;  %s1387_s8 = sshll.u32 %s2446_s4, 4  ;;  %s1388_s8 = int_to_ptr.hbm [resolvable:$true] %s1387_s8 }
 0x390   : > { %s1770_s9 = smov [#allocation8]  }
 0x391   : > { %s1385_s10 = sshll.u32 %s1770_s9, 4  ;;  %s1386_s10 = int_to_ptr.vmem [resolvable:$true] %s1385_s10 }
 0x392   : > { %1544 = dma.vmem_to_hbm [thread:$0]  (%p1553_p11), %s1386_s10, 128, %s1388_s8, [#allocation7]  }
 0x393   : > { %1741 = dma.done.wait (%p1553_p11), [#allocation7], 128  }
 0x394   : > { %1743 = vsyncadd (%p1553_p11), [#allocation7], 4294967168 }
 0x395 PF: > { %s16_s17 = sadd.s32 1, %s1754_s17   ;;  %s2487_s15 = smov %s1750_s16 }
 0x396   : > { %p13_p12 = scmp.ge.s32.totalorder %s16_s17, 4   ;;  %s2488_s16 = smov %s2490_s19 }
 0x398   :  { %15 = sbr.rel (!%p13_p12) target bundleno = 3 (0x3), region = 90 }
 0x39d   :  { %1401 = vsyncpa [#allocation6], 1 }
 0x39e   :  { %1403 = vsyncpa [#allocation6 + $0x1], 1 }
 0x39f   :  { %1404 = vsyncpa [#allocation7], 1 }
 0x3a0   :  { %1406 = vsyncpa [#allocation7 + $0x1], 1 }

</bundles_post_ra>
